<compile_context>
chip_gen: v7x
topology: tpu7x:2x2x1
jax: 0.10.0
libtpu: 0.0.40
codegen_flags: <defaults>
</compile_context>

<pallas_src>
import functools

import jax
import jax.numpy as jnp
from jax.experimental import pallas as pl
from jax.experimental.pallas import tpu as pltpu


# Set to jnp.bfloat16 on v6e/v7x for a shorter per-step MXU latency
# (loosen the accuracy tolerances to ~1e-2 if you do).
MXU_DTYPE = jnp.float32


def _rnn_fc_softmax_kernel(x_ref, wih_ref, whh_ref, b_ref, wfc_ref, bfc_ref,
                           out_ref, *, seq_len, batch):
    """Full RNN recurrence + final linear + softmax, all in VMEM/vregs.

    x_ref   : [T*B, I]  time-major flattened input (row t*B + b)
    wih_ref : [I, H]    W_ih^T
    whh_ref : [H, H]    W_hh^T         (dtype = MXU_DTYPE)
    b_ref   : [1, H]    b_ih + b_hh
    wfc_ref : [H, O]    W_fc^T
    bfc_ref : [1, O]    b_fc
    out_ref : [B, O]    softmax probabilities
    """
    # --- Hoisted input projection: one MXU pass for ALL timesteps, with the
    #     (b_ih + b_hh) bias absorbed so nothing is re-broadcast in the loop.
    x_proj = (jnp.dot(x_ref[...], wih_ref[...],
                      preferred_element_type=jnp.float32)
              + b_ref[...])                               # [T*B, H] f32

    whh = whh_ref[...]                                    # stays in vregs
    hidden = whh.shape[0]

    # --- Recurrence: h carried in vregs, fully unrolled (seq_len is a small
    #     static int), so the only per-step work on the serial chain is one
    #     MXU dot, one VPU add and one EUP tanh.
    h = jnp.zeros((batch, hidden), jnp.float32)
    for t in range(seq_len):
        xp_t = x_proj[t * batch:(t + 1) * batch, :]       # static slice
        h = jnp.tanh(xp_t + jnp.dot(h.astype(whh.dtype), whh,
                                    preferred_element_type=jnp.float32))

    # --- Final linear layer on the last hidden state.
    logits = (jnp.dot(h, wfc_ref[...], preferred_element_type=jnp.float32)
              + bfc_ref[...])                             # [B, O]

    # --- Softmax over dim=1.  Exact divide: output is only [B, O] (tiny), so
    #     the approx EUP reciprocal saves nothing but costs ~1e-3 of accuracy
    #     in the row sums -- use the exact path.
    m = jnp.max(logits, axis=1, keepdims=True)
    e = jnp.exp(logits - m)
    s = jnp.sum(e, axis=1, keepdims=True)
    out_ref[...] = (e / s).astype(out_ref.dtype)


@jax.jit
def cricket_team_net_rnn(x, w_ih, w_hh, b_ih, b_hh, w_fc, b_fc):
    """Wrapper. x: [B, T, I] (batch_first, like PyTorch). Returns [B, O]."""
    B, T, I = x.shape
    H = w_ih.shape[0]          # torch layout: w_ih is [H, I]
    O = w_fc.shape[0]          # torch layout: w_fc is [O, H]

    # Layout plumbing done once in the wrapper: time-major flatten so the
    # kernel's hoisted projection is a single plain [T*B, I] @ [I, H] matmul.
    x2d = jnp.transpose(x, (1, 0, 2)).reshape(T * B, I).astype(jnp.float32)
    wih_t = jnp.transpose(w_ih).astype(jnp.float32)            # [I, H]
    whh_t = jnp.transpose(w_hh).astype(MXU_DTYPE)              # [H, H]
    b = (b_ih + b_hh).reshape(1, H).astype(jnp.float32)        # [1, H]
    wfc_t = jnp.transpose(w_fc).astype(jnp.float32)            # [H, O]
    bfc = b_fc.reshape(1, O).astype(jnp.float32)               # [1, O]

    vmem = pltpu.MemorySpace.VMEM
    kernel = functools.partial(_rnn_fc_softmax_kernel, seq_len=T, batch=B)
    out = pl.pallas_call(
        kernel,
        out_shape=jax.ShapeDtypeStruct((B, O), jnp.float32),
        in_specs=[
            pl.BlockSpec(memory_space=vmem),   # x2d [T*B, I]
            pl.BlockSpec(memory_space=vmem),   # W_ih^T
            pl.BlockSpec(memory_space=vmem),   # W_hh^T
            pl.BlockSpec(memory_space=vmem),   # fused rnn bias
            pl.BlockSpec(memory_space=vmem),   # W_fc^T
            pl.BlockSpec(memory_space=vmem),   # fc bias
        ],
        out_specs=pl.BlockSpec(memory_space=vmem),
    )(x2d, wih_t, whh_t, b, wfc_t, bfc)
    return out


def _init_params(key, input_size, hidden_size, output_size):
    """Deterministic init mimicking PyTorch's uniform(-1/sqrt(H), 1/sqrt(H))."""
    ks = jax.random.split(key, 6)
    s = 1.0 / jnp.sqrt(hidden_size)
    w_ih = jax.random.uniform(ks[0], (hidden_size, input_size),
                              minval=-s, maxval=s, dtype=jnp.float32)
    w_hh = jax.random.uniform(ks[1], (hidden_size, hidden_size),
                              minval=-s, maxval=s, dtype=jnp.float32)
    b_ih = jax.random.uniform(ks[2], (hidden_size,),
                              minval=-s, maxval=s, dtype=jnp.float32)
    b_hh = jax.random.uniform(ks[3], (hidden_size,),
                              minval=-s, maxval=s, dtype=jnp.float32)
    w_fc = jax.random.uniform(ks[4], (output_size, hidden_size),
                              minval=-s, maxval=s, dtype=jnp.float32)
    b_fc = jax.random.uniform(ks[5], (output_size,),
                              minval=-s, maxval=s, dtype=jnp.float32)
    return w_ih, w_hh, b_ih, b_hh, w_fc, b_fc


def _reference(x, w_ih, w_hh, b_ih, b_hh, w_fc, b_fc):
    """Pure-JAX reference for correctness checking."""
    B, T, I = x.shape
    H = w_ih.shape[0]
    h = jnp.zeros((B, H), jnp.float32)
    for t in range(T):
        h = jnp.tanh(x[:, t, :] @ w_ih.T + b_ih + h @ w_hh.T + b_hh)
    logits = h @ w_fc.T + b_fc
    return jax.nn.softmax(logits, axis=1)


if __name__ == "__main__":
    # Small shapes consistent with the module's forward:
    # batch=2, seq=8, input_size=16, hidden_size=32, output_size=8.
    B, T, I, H, O = 2, 8, 16, 32, 8

    key = jax.random.PRNGKey(0)
    k_x, k_p = jax.random.split(key)
    x = jax.random.normal(k_x, (B, T, I), dtype=jnp.float32)
    params = _init_params(k_p, I, H, O)

    out = cricket_team_net_rnn(x, *params)
    out = jax.block_until_ready(out)

    ref = _reference(x, *params)
    assert out.shape == (B, O)
    assert jnp.allclose(out, ref, atol=1e-3, rtol=1e-3), "mismatch vs reference"
    assert jnp.allclose(jnp.sum(out, axis=1), 1.0, atol=1e-3)

    print("KERNEL_OK")
</pallas_src>

<mosaic_0001>
module attributes {stable_mosaic.version = 11 : i64} {
  func.func @_rnn_fc_softmax_kernel(%arg0: memref<16x16xf32, #tpu.memory_space<vmem>>, %arg1: memref<16x32xf32, #tpu.memory_space<vmem>>, %arg2: memref<32x32xf32, #tpu.memory_space<vmem>>, %arg3: memref<1x32xf32, #tpu.memory_space<vmem>>, %arg4: memref<32x8xf32, #tpu.memory_space<vmem>>, %arg5: memref<1x8xf32, #tpu.memory_space<vmem>>, %arg6: memref<2x8xf32, #tpu.memory_space<vmem>>) attributes {dimension_semantics = [], scalar_prefetch = 0 : i64, scratch_operands = 0 : i64, tpu.core_type = #tpu.core_type<tc>} {
    %c0 = arith.constant 0 : index
    %c0_0 = arith.constant 0 : index
    %0 = vector.load %arg0[%c0, %c0_0] : memref<16x16xf32, #tpu.memory_space<vmem>>, vector<16x16xf32>
    %c0_1 = arith.constant 0 : index
    %c0_2 = arith.constant 0 : index
    %1 = vector.load %arg1[%c0_1, %c0_2] : memref<16x32xf32, #tpu.memory_space<vmem>>, vector<16x32xf32>
    %cst = arith.constant dense<0.000000e+00> : vector<16x32xf32>
    %2 = tpu.matmul %0, %1, %cst {dimension_numbers = #tpu.dot_dimension_numbers<[1], [0], [0], [1], [0, 0, 1, 1], [], []>} : vector<16x16xf32>, vector<16x32xf32>, vector<16x32xf32> -> vector<16x32xf32>
    %c0_3 = arith.constant 0 : index
    %c0_4 = arith.constant 0 : index
    %3 = vector.load %arg3[%c0_3, %c0_4] : memref<1x32xf32, #tpu.memory_space<vmem>>, vector<1x32xf32>
    %4 = vector.broadcast %3 : vector<1x32xf32> to vector<16x32xf32>
    %5 = arith.addf %2, %4 : vector<16x32xf32>
    %c0_5 = arith.constant 0 : index
    %c0_6 = arith.constant 0 : index
    %6 = vector.load %arg2[%c0_5, %c0_6] : memref<32x32xf32, #tpu.memory_space<vmem>>, vector<32x32xf32>
    %cst_7 = arith.constant 0.000000e+00 : f32
    %7 = vector.broadcast %cst_7 : f32 to vector<2x32xf32>
    %8 = vector.extract_strided_slice %5 {offsets = [0, 0], sizes = [2, 32], strides = [1, 1]} : vector<16x32xf32> to vector<2x32xf32>
    %cst_8 = arith.constant dense<0.000000e+00> : vector<2x32xf32>
    %9 = tpu.matmul %7, %6, %cst_8 {dimension_numbers = #tpu.dot_dimension_numbers<[1], [0], [0], [1], [0, 0, 1, 1], [], []>} : vector<2x32xf32>, vector<32x32xf32>, vector<2x32xf32> -> vector<2x32xf32>
    %10 = arith.addf %8, %9 : vector<2x32xf32>
    %11 = math.tanh %10 : vector<2x32xf32>
    %12 = vector.extract_strided_slice %5 {offsets = [2, 0], sizes = [2, 32], strides = [1, 1]} : vector<16x32xf32> to vector<2x32xf32>
    %cst_9 = arith.constant dense<0.000000e+00> : vector<2x32xf32>
    %13 = tpu.matmul %11, %6, %cst_9 {dimension_numbers = #tpu.dot_dimension_numbers<[1], [0], [0], [1], [0, 0, 1, 1], [], []>} : vector<2x32xf32>, vector<32x32xf32>, vector<2x32xf32> -> vector<2x32xf32>
    %14 = arith.addf %12, %13 : vector<2x32xf32>
    %15 = math.tanh %14 : vector<2x32xf32>
    %16 = vector.extract_strided_slice %5 {offsets = [4, 0], sizes = [2, 32], strides = [1, 1]} : vector<16x32xf32> to vector<2x32xf32>
    %cst_10 = arith.constant dense<0.000000e+00> : vector<2x32xf32>
    %17 = tpu.matmul %15, %6, %cst_10 {dimension_numbers = #tpu.dot_dimension_numbers<[1], [0], [0], [1], [0, 0, 1, 1], [], []>} : vector<2x32xf32>, vector<32x32xf32>, vector<2x32xf32> -> vector<2x32xf32>
    %18 = arith.addf %16, %17 : vector<2x32xf32>
    %19 = math.tanh %18 : vector<2x32xf32>
    %20 = vector.extract_strided_slice %5 {offsets = [6, 0], sizes = [2, 32], strides = [1, 1]} : vector<16x32xf32> to vector<2x32xf32>
    %cst_11 = arith.constant dense<0.000000e+00> : vector<2x32xf32>
    %21 = tpu.matmul %19, %6, %cst_11 {dimension_numbers = #tpu.dot_dimension_numbers<[1], [0], [0], [1], [0, 0, 1, 1], [], []>} : vector<2x32xf32>, vector<32x32xf32>, vector<2x32xf32> -> vector<2x32xf32>
    %22 = arith.addf %20, %21 : vector<2x32xf32>
    %23 = math.tanh %22 : vector<2x32xf32>
    %24 = vector.extract_strided_slice %5 {offsets = [8, 0], sizes = [2, 32], strides = [1, 1]} : vector<16x32xf32> to vector<2x32xf32>
    %cst_12 = arith.constant dense<0.000000e+00> : vector<2x32xf32>
    %25 = tpu.matmul %23, %6, %cst_12 {dimension_numbers = #tpu.dot_dimension_numbers<[1], [0], [0], [1], [0, 0, 1, 1], [], []>} : vector<2x32xf32>, vector<32x32xf32>, vector<2x32xf32> -> vector<2x32xf32>
    %26 = arith.addf %24, %25 : vector<2x32xf32>
    %27 = math.tanh %26 : vector<2x32xf32>
    %28 = vector.extract_strided_slice %5 {offsets = [10, 0], sizes = [2, 32], strides = [1, 1]} : vector<16x32xf32> to vector<2x32xf32>
    %cst_13 = arith.constant dense<0.000000e+00> : vector<2x32xf32>
    %29 = tpu.matmul %27, %6, %cst_13 {dimension_numbers = #tpu.dot_dimension_numbers<[1], [0], [0], [1], [0, 0, 1, 1], [], []>} : vector<2x32xf32>, vector<32x32xf32>, vector<2x32xf32> -> vector<2x32xf32>
    %30 = arith.addf %28, %29 : vector<2x32xf32>
    %31 = math.tanh %30 : vector<2x32xf32>
    %32 = vector.extract_strided_slice %5 {offsets = [12, 0], sizes = [2, 32], strides = [1, 1]} : vector<16x32xf32> to vector<2x32xf32>
    %cst_14 = arith.constant dense<0.000000e+00> : vector<2x32xf32>
    %33 = tpu.matmul %31, %6, %cst_14 {dimension_numbers = #tpu.dot_dimension_numbers<[1], [0], [0], [1], [0, 0, 1, 1], [], []>} : vector<2x32xf32>, vector<32x32xf32>, vector<2x32xf32> -> vector<2x32xf32>
    %34 = arith.addf %32, %33 : vector<2x32xf32>
    %35 = math.tanh %34 : vector<2x32xf32>
    %36 = vector.extract_strided_slice %5 {offsets = [14, 0], sizes = [2, 32], strides = [1, 1]} : vector<16x32xf32> to vector<2x32xf32>
    %cst_15 = arith.constant dense<0.000000e+00> : vector<2x32xf32>
    %37 = tpu.matmul %35, %6, %cst_15 {dimension_numbers = #tpu.dot_dimension_numbers<[1], [0], [0], [1], [0, 0, 1, 1], [], []>} : vector<2x32xf32>, vector<32x32xf32>, vector<2x32xf32> -> vector<2x32xf32>
    %38 = arith.addf %36, %37 : vector<2x32xf32>
    %39 = math.tanh %38 : vector<2x32xf32>
    %c0_16 = arith.constant 0 : index
    %c0_17 = arith.constant 0 : index
    %40 = vector.load %arg4[%c0_16, %c0_17] : memref<32x8xf32, #tpu.memory_space<vmem>>, vector<32x8xf32>
    %cst_18 = arith.constant dense<0.000000e+00> : vector<2x8xf32>
    %41 = tpu.matmul %39, %40, %cst_18 {dimension_numbers = #tpu.dot_dimension_numbers<[1], [0], [0], [1], [0, 0, 1, 1], [], []>} : vector<2x32xf32>, vector<32x8xf32>, vector<2x8xf32> -> vector<2x8xf32>
    %c0_19 = arith.constant 0 : index
    %c0_20 = arith.constant 0 : index
    %42 = vector.load %arg5[%c0_19, %c0_20] : memref<1x8xf32, #tpu.memory_space<vmem>>, vector<1x8xf32>
    %43 = vector.broadcast %42 : vector<1x8xf32> to vector<2x8xf32>
    %44 = arith.addf %41, %43 : vector<2x8xf32>
    %cst_21 = arith.constant dense<0xFF800000> : vector<2xf32>
    %45 = vector.multi_reduction <maximumf>, %44, %cst_21 [1] : vector<2x8xf32> to vector<2xf32>
    %46 = vector.shape_cast %45 : vector<2xf32> to vector<2x1xf32>
    %47 = vector.broadcast %46 : vector<2x1xf32> to vector<2x8xf32>
    %48 = arith.subf %44, %47 : vector<2x8xf32>
    %49 = math.exp %48 : vector<2x8xf32>
    %cst_22 = arith.constant dense<0.000000e+00> : vector<2xf32>
    %50 = vector.multi_reduction <add>, %49, %cst_22 [1] : vector<2x8xf32> to vector<2xf32>
    %51 = vector.shape_cast %50 : vector<2xf32> to vector<2x1xf32>
    %52 = vector.broadcast %51 : vector<2x1xf32> to vector<2x8xf32>
    %53 = arith.divf %49, %52 : vector<2x8xf32>
    %c0_23 = arith.constant 0 : index
    %c0_24 = arith.constant 0 : index
    %54 = vector.load %arg6[%c0_23, %c0_24] : memref<2x8xf32, #tpu.memory_space<vmem>>, vector<2x8xf32>
    tpu.vector_store %arg6[%c0_23, %c0_24], %53 {strides = array<i32>} : memref<2x8xf32, #tpu.memory_space<vmem>>, vector<2x8xf32>,
    return
  }
}

</mosaic_0001>

<bundles_post_ra>
// kernel: cricket_team_net_rnn.1
= control target key start
LH: loop header
LB: loop body
LE: loop exit
PB: predicated region body
PF: predicated region fallthrough
CT: control target
= control target key end

     0   :  { %vm35_vm0 = vcmask 130048   ;;  %v1130_v3 = vmov 0.0|0.0   ;;  %vm1131_vm1 = vmmov 0   ;;  %v1132_v10 = vmov 0.0   ;;  %s1299_s0 = inlined_call_operand.vmem [shape: f32[16,16], index: 0, kind: input, shape index: {}]   ;;  %s1300_s1 = inlined_call_operand.vmem [shape: f32[16,32], index: 1, kind: input, shape index: {}]   ;;  %s1301_s2 = inlined_call_operand.vmem [shape: f32[32,32], index: 2, kind: input, shape index: {}]   ;;  %s1302_s3 = inlined_call_operand.vmem [shape: f32[1,32], index: 3, kind: input, shape index: {}]   ;;  %s1303_s4 = inlined_call_operand.vmem [shape: f32[32,8], index: 4, kind: input, shape index: {}]   ;;  %s1304_s5 = inlined_call_operand.vmem [shape: f32[1,8], index: 5, kind: input, shape index: {}]   ;;  %s1305_s6 = inlined_call_operand.hbm [shape: f32[2,8], index: 6, kind: output, shape index: {}]  }
   0x1   :  { %v26_v0 = vld [vmem:[%s1300_s1] sm:$0xff]  ;;  %v27_v1 = vld [vmem:[%s1300_s1 + $0x8] sm:$0xff]  ;;  %1028 = vmatprep.subr.bf16.mxu1 %v1130_v3  ;;  %v119_v8 = vld [vmem:[%s1301_s2 + $0x10] sm:$0xff]  ;;  %933 = vmatprep.mubr.msk.f32.mxu1 %vm1131_vm1, %v1132_v10 }
   0x2   :  { %v117_v2 = vld [vmem:[%s1301_s2] sm:$0xff]  ;;  %v1024_v4 = vpack.c.bf16 %v27_v1, %v26_v0  ;;  %v118_v5 = vld [vmem:[%s1301_s2 + $0x8] sm:$0xff]  ;;  %v120_v9 = vld [vmem:[%s1301_s2 + $0x18] sm:$0xff] }
   0x3   :  { %v24_v6 = vld [vmem:[%s1299_s0] sm:$0xff]  ;;  %v1185_v7 = vpack.c.bf16 %v118_v5, %v117_v2 }
   0x4   :  { %922 = vmatprep.mubr.msk.f32.mxu0 %vm35_vm0, %v24_v6 }
   0x5   :  { %11 = vsyncpa [#allocation3], 0  ;;  %1025 = vmatprep.subr.bf16.mxu0 %v1024_v4  ;;  %1030 = vmatpush3.bf16.msra.mxu1 %v1185_v7  ;;  %v25_v11 = vld [vmem:[%s1299_s0 + $0x8] sm:$0xff]  ;;  %v1200_v12 = vpack.c.bf16 %v120_v9, %v119_v8  ;;  %v857_v13 = vld [vmem:[%s1302_s3] ss:$0 sm:$0xff]  ;;  %vm121_vm2 = vcmask 261120  }
   0x6   :  { %1027 = vmatpush3.bf16.msra.mxu0 %v1024_v4  ;;  %1031 = vmatprep.subr.bf16.mxu1 %v1130_v3  ;;  %v745_v56 = vld [vmem:[%s1303_s4] sm:$0xff]  ;;  %v746_v57 = vld [vmem:[%s1303_s4 + $0x8] sm:$0xff]  ;;  %v747_v59 = vld [vmem:[%s1303_s4 + $0x10] sm:$0xff]  ;;  %vm830_vm3 = vcmask 58368  }
   0x7   :  { %1034 = vmatprep.subr.bf16.mxu0 %v1130_v3  ;;  %v1077_v58 = vpack.c.bf16 %v746_v57, %v745_v56  ;;  %v748_v60 = vld [vmem:[%s1303_s4 + $0x18] sm:$0xff]  ;;  %s1133_s4 = smov [#allocation2]  }
   0x8   :  { %v1080_v61 = vpack.c.bf16 %v748_v60, %v747_v59  ;;  %s849_s21 = sshll.u32 %s1133_s4, 4  ;;  %s850_s21 = int_to_ptr.vmem [resolvable:$true] %s849_s21 }
   0x9   :  { %923 = vmatmul.mubr.msk.f32.vlgmr.msra.gmra.mrb[0].mxu0 %vm35_vm0, %v25_v11  ;;  %1033 = vmatpush3.bf16.msra.mxu1 %v1200_v12  ;;  %p1111_p1 = scmp.lt.s32.totalorder %s850_s21, %s850_s21 }
   0xa   :  { %1036 = vmatpush3.bf16.msra.mxu0 %v1185_v7  ;;  %944 = vmatprep.mubr.msk.f32.mxu0 %vm1131_vm1, %v1132_v10 }
   0xb   :  { %1037 = vmatprep.subr.bf16.mxu0 %v1130_v3  ;;  %1040 = vmatprep.subr.bf16.mxu1 %v1130_v3 }
   0xc   :  { %934 = vmatmul.mubr.f32.vlgmr.msra.gmra.mrb[0].mxu1 %v1132_v10 }
   0xd   :  { %1042 = vmatpush3.bf16.msra.mxu1 %v1185_v7  ;;  %955 = vmatprep.mubr.msk.f32.mxu1 %vm1131_vm1, %v1132_v10 }
   0xe   :  { %1039 = vmatpush3.bf16.msra.mxu0 %v1200_v12  ;;  %1043 = vmatprep.subr.bf16.mxu1 %v1130_v3 }
   0xf   :  { %1046 = vmatprep.subr.bf16.mxu0 %v1130_v3 }
  0x11   :  { %1045 = vmatpush3.bf16.msra.mxu1 %v1200_v12 }
  0x12   :  { %1052 = vmatprep.subr.bf16.mxu1 %v1130_v3 }
  0xdc   :  { %v924_v14 = vpop.f32.mrb[0].mxu0 }
  0xdd   :  { %v1223_v15 = vadd.f32 %v924_v14, %v857_v13  ;;  %v108_v16 = vpop.f32.mrb[1].mxu0 }
  0xde   :  { %v109_v17 = vadd.f32 %v857_v13, %v108_v16 }
  0xdf   :  { %v191_v18 = vpop.f32.mrb[0].mxu1 }
  0xe0   :  { %v195_v19 = vadd.f32 %v191_v18, %v109_v17  ;;  %v935_v20 = vpop.f32.mrb[1].mxu1 }
  0xe2   :  { %1086 = vtanh.f32 %v195_v19 }
  0xec   :  { %v1087_v21 = vpop.eup %1086 }
  0xed   :  { %945 = vmatmul.mubr.msk.f32.vlgmr.msra.gmra.mrb[2].mxu0 %vm121_vm2, %v1087_v21 }
  0xee   :  { %1048 = vmatpush3.bf16.msra.mxu0 %v1185_v7  ;;  %966 = vmatprep.mubr.msk.f32.mxu0 %vm1131_vm1, %v1132_v10 }
  0xef   :  { %1049 = vmatprep.subr.bf16.mxu0 %v1130_v3 }
  0xf2   :  { %1051 = vmatpush3.bf16.msra.mxu0 %v1200_v12 }
  0xf3   :  { %1058 = vmatprep.subr.bf16.mxu0 %v1130_v3 }
 0x1c0   :  { %v266_v22 = vpop.f32.mrb[2].mxu0 }
 0x1c1   :  { %v271_v23 = vrot.slane %v266_v22, 6  ;;  %v946_v24 = vpop.f32.mrb[3].mxu0 }
 0x1c3   :  { %v273_v25 = vadd.f32 %v271_v23, %v109_v17 }
 0x1c5   :  { %1088 = vtanh.f32 %v273_v25 }
 0x1cf   :  { %v1089_v26 = vpop.eup %1088 }
 0x1d0   :  { %v276_v27 = vrot.slane %v1089_v26, 2 }
 0x1d2   :  { %956 = vmatmul.mubr.msk.f32.vlgmr.msra.gmra.mrb[2].mxu1 %vm121_vm2, %v276_v27 }
 0x1d3   :  { %1054 = vmatpush3.bf16.msra.mxu1 %v1185_v7  ;;  %977 = vmatprep.mubr.msk.f32.mxu1 %vm1131_vm1, %v1132_v10 }
 0x1d4   :  { %1055 = vmatprep.subr.bf16.mxu1 %v1130_v3 }
 0x1d7   :  { %1057 = vmatpush3.bf16.msra.mxu1 %v1200_v12 }
 0x1d8   :  { %1064 = vmatprep.subr.bf16.mxu1 %v1130_v3 }
 0x2a5   :  { %v345_v28 = vpop.f32.mrb[2].mxu1 }
 0x2a6   :  { %v350_v29 = vrot.slane %v345_v28, 4  ;;  %v957_v30 = vpop.f32.mrb[3].mxu1 }
 0x2a8   :  { %v352_v31 = vadd.f32 %v350_v29, %v109_v17 }
 0x2aa   :  { %1090 = vtanh.f32 %v352_v31 }
 0x2b4   :  { %v1091_v32 = vpop.eup %1090 }
 0x2b5   :  { %v355_v33 = vrot.slane %v1091_v32, 4 }
 0x2b7   :  { %967 = vmatmul.mubr.msk.f32.vlgmr.msra.gmra.mrb[4].mxu0 %vm121_vm2, %v355_v33 }
 0x2b8   :  { %1060 = vmatpush3.bf16.msra.mxu0 %v1185_v7  ;;  %988 = vmatprep.mubr.msk.f32.mxu0 %vm1131_vm1, %v1132_v10 }
 0x2b9   :  { %1061 = vmatprep.subr.bf16.mxu0 %v1130_v3 }
 0x2bc   :  { %1063 = vmatpush3.bf16.msra.mxu0 %v1200_v12 }
 0x2bd   :  { %1070 = vmatprep.subr.bf16.mxu0 %v1130_v3 }
 0x38a   :  { %v424_v34 = vpop.f32.mrb[4].mxu0 }
 0x38b   :  { %v429_v35 = vrot.slane %v424_v34, 2  ;;  %v968_v36 = vpop.f32.mrb[5].mxu0 }
 0x38d   :  { %v431_v37 = vadd.f32 %v429_v35, %v109_v17 }
 0x38f   :  { %1092 = vtanh.f32 %v431_v37 }
 0x399   :  { %v1093_v38 = vpop.eup %1092 }
 0x39a   :  { %v434_v39 = vrot.slane %v1093_v38, 6 }
 0x39c   :  { %978 = vmatmul.mubr.msk.f32.vlgmr.msra.gmra.mrb[4].mxu1 %vm121_vm2, %v434_v39 }
 0x39d   :  { %1066 = vmatpush3.bf16.msra.mxu1 %v1185_v7  ;;  %999 = vmatprep.mubr.msk.f32.mxu1 %vm1131_vm1, %v1132_v10 }
 0x39e   :  { %1067 = vmatprep.subr.bf16.mxu1 %v1130_v3 }
 0x3a1   :  { %1069 = vmatpush3.bf16.msra.mxu1 %v1200_v12 }
 0x3a2   :  { %1076 = vmatprep.subr.bf16.mxu1 %v1130_v3 }
 0x46f   :  { %v503_v40 = vpop.f32.mrb[4].mxu1 }
 0x470   :  { %v507_v41 = vadd.f32 %v503_v40, %v1223_v15  ;;  %v979_v42 = vpop.f32.mrb[5].mxu1 }
 0x472   :  { %1094 = vtanh.f32 %v507_v41 }
 0x47c   :  { %v1095_v43 = vpop.eup %1094 }
 0x47d   :  { %989 = vmatmul.mubr.msk.f32.vlgmr.msra.gmra.mrb[6].mxu0 %vm121_vm2, %v1095_v43 }
 0x47e   :  { %1072 = vmatpush3.bf16.msra.mxu0 %v1185_v7  ;;  %1010 = vmatprep.mubr.msk.f32.mxu0 %vm1131_vm1, %v1132_v10 }
 0x47f   :  { %1073 = vmatprep.subr.bf16.mxu0 %v1130_v3 }
 0x482   :  { %1075 = vmatpush3.bf16.msra.mxu0 %v1200_v12 }
 0x550   :  { %v578_v44 = vpop.f32.mrb[6].mxu0 }
 0x551   :  { %v583_v45 = vrot.slane %v578_v44, 6  ;;  %v990_v46 = vpop.f32.mrb[7].mxu0 }
 0x553   :  { %v585_v47 = vadd.f32 %v583_v45, %v1223_v15 }
 0x555   :  { %1096 = vtanh.f32 %v585_v47 }
 0x55f   :  { %v1097_v48 = vpop.eup %1096 }
 0x560   :  { %v588_v49 = vrot.slane %v1097_v48, 2 }
 0x562   :  { %1000 = vmatmul.mubr.msk.f32.vlgmr.msra.gmra.mrb[6].mxu1 %vm121_vm2, %v588_v49 }
 0x563   :  { %1021 = vmatprep.mubr.msk.f32.mxu1 %vm1131_vm1, %v1132_v10  ;;  %1078 = vmatpush3.bf16.msra.mxu1 %v1077_v58 }
 0x564   :  { %1079 = vmatprep.subr.bf16.mxu1 %v1130_v3  ;;  %v867_v3 = vld [vmem:[%s1304_s5] ss:$0 sm:$0xff]  ;;  %s1106_s5 = scalar_lea.vmem %s850_s21, 32 }
 0x565   :  { %p1107_p0 = scmp.ne.s32.totalorder %s850_s21, %s1106_s5  ;;  %p1112_p2 = scmp.lt.s32.totalorder %s1106_s5, %s1106_s5 }
 0x567   :  { %1081 = vmatpush3.bf16.msra.mxu1 %v1080_v61  ;;  %p1113_p3 = por %p1112_p2, %p1111_p1 }
 0x569   :  { %p1114_p4 = pnand %p1113_p3, %p1107_p0 }
 0x635   :  { %v657_v50 = vpop.f32.mrb[6].mxu1 }
 0x636   :  { %v662_v51 = vrot.slane %v657_v50, 4  ;;  %v1001_v52 = vpop.f32.mrb[7].mxu1 }
 0x638   :  { %v664_v53 = vadd.f32 %v662_v51, %v1223_v15 }
 0x63a   :  { %1098 = vtanh.f32 %v664_v53 }
 0x644   :  { %v1099_v54 = vpop.eup %1098 }
 0x645   :  { %v667_v55 = vrot.slane %v1099_v54, 4 }
 0x647   :  { %1011 = vmatmul.mubr.msk.f32.vlgmr.msra.gmra.mrb[8].mxu0 %vm121_vm2, %v667_v55 }
 0x71a   :  { %v736_v62 = vpop.f32.mrb[8].mxu0 }
 0x71b   :  { %v741_v63 = vrot.slane %v736_v62, 2  ;;  %v1012_v0 = vpop.f32.mrb[9].mxu0 }
 0x71d   :  { %v743_v1 = vadd.f32 %v741_v63, %v1223_v15 }
 0x71f   :  { %1100 = vtanh.f32 %v743_v1 }
 0x729   :  { %v1101_v2 = vpop.eup %1100 }
 0x72a   :  { %v757_v4 = vrot.slane %v1101_v2, 6 }
 0x72c   :  { %1022 = vmatmul.mubr.msk.f32.vlgmr.msra.gmra.mrb[8].mxu1 %vm121_vm2, %v757_v4 }
 0x7ff   :  { %v826_v5 = vpop.f32.mrb[8].mxu1 }
 0x800   :  { %v827_v6 = vadd.f32 %v867_v3, %v826_v5  ;;  %v1023_v7 = vpop.f32.mrb[9].mxu1 }
 0x802   :  { %v831_v8 = vsel %vm830_vm3, %v827_v6, -inf }
 0x803   :  { %832 = vmax.xlane.f32.xlu0 %v831_v8 }
 0x890   :  { %v833_v9 = vpop.xlane.xlu0 %832 }
 0x891   :  { %v834_v10 = vsub.f32 %v827_v6, %v833_v9 }
 0x893   :  { %v835_v11 = vmul.f32 1.442695, %v834_v10 }
 0x895   :  { %1102 = vpow2.f32 %v835_v11 }
 0x89f   :  { %v1103_v12 = vpop.eup %1102 }
 0x8a0   :  { %v837_v13 = vsel %vm830_vm3, %v1103_v12, 0.0 }
 0x8a1   :  { %838 = vadd.xlane.f32.xlu0 %v837_v13 }
 0x92e   :  { %v839_v14 = vpop.xlane.xlu0 %838 }
 0x92f   :  { %1104 = vrcp.f32 %v839_v14 }
 0x939   :  { %v1105_v15 = vpop.eup %1104 }
 0x93a   :  { %v841_v16 = vmul.f32 %v1105_v15, %v1103_v12 }
 0x93c   :  { %842 = vst.msk [vmem:[#allocation2] sm:$0x3] %vm830_vm3, %v841_v16 }
 0x93d   :  { %1117 = shalt.err (!%p1114_p4)
}
 0x93e   :  { %s1118_s24 = scalar_lea.hbm %s1305_s6, 32 }
 0x93f   :  { %p1119_p5 = scmp.ne.s32.totalorder %s1305_s6, %s1118_s24  ;;  %p1122_p6 = scmp.lt.u32.totalorder %s1118_s24, %s1305_s6 }
 0x941   :  { %p1124_p7 = pnand %p1122_p6, %p1119_p5 }
 0x943   :  { %1127 = shalt.err (!%p1124_p7)
}
 0x944   :  { %852 = dma.vmem_to_hbm [thread:$0]  %s850_s21, 32, %s1305_s6, [#allocation3]  }
 0x945   :  { %1128 = dma.done.wait [#allocation3], 32  }
 0x946   :  { %1129 = vsyncadd [#allocation3], 4294967264 }
 0x947   :  { %856 = vsyncpa [#allocation3], 1 }

</bundles_post_ra>
